<compile_context>
chip_gen: v5e
topology: v5e:2x2
jax: 0.10.0
libtpu: 0.0.40
codegen_flags: <defaults>
</compile_context>

<pallas_src>
import jax
import jax.numpy as jnp
from jax.experimental import pallas as pl
from jax.experimental.pallas import tpu as pltpu


def _identity_kernel(x_ref, o_ref):
    # Pure copy body: one vld -> vst per vreg; no per-element arithmetic.
    o_ref[...] = x_ref[...]


_LANE_CANDIDATES = (4096, 2048, 1024, 512, 256, 128)  # lane-dense widths (multiples of 128)
_TILE_BYTES_TARGET = 2 * 1024 * 1024                  # ~2 MiB/tile; x4 buffers ≈ 8 MiB VMEM
_VMEM_LIMIT_BYTES = 32 * 1024 * 1024                  # explicit scoped-VMEM ceiling (safe on all chips)


def identity(x: jax.Array) -> jax.Array:
    """nn.Identity forward: returns x unchanged (bit-exact)."""
    if x.size == 0:
        # Degenerate: nothing to move; avoid fragile reshapes of 0-element arrays.
        return x

    total = int(x.size)

    # Largest lane-dense width that divides the flat size exactly.
    lanes = next((l for l in _LANE_CANDIDATES if total % l == 0), None)
    if lanes is None:
        # Flat size not a multiple of 128 (scalars / tiny odd shapes): identity is
        # layout-agnostic and bit-exact, so skip the kernel entirely — zero HBM
        # traffic is the optimal path anyway.
        return x

    rows = total // lanes
    x2d = x.reshape(rows, lanes)

    itemsize = jnp.dtype(x.dtype).itemsize
    # Sublane packing: 8 rows for 32-bit, 16 for bf16/fp16, 32 for int8/fp8.
    sublane_pack = 8 * max(1, 4 // max(1, itemsize))

    # Rows per tile sized against the scoped-VMEM budget (double-buffered in + out),
    # rounded down to a sublane-pack multiple so every full tile is (8k, 128m) aligned.
    tm = max(
        sublane_pack,
        (_TILE_BYTES_TARGET // (lanes * itemsize)) // sublane_pack * sublane_pack,
    )

    if rows <= tm:
        # Whole array in one block (block == full array dims, so the (8,128)
        # divisibility rule does not apply even for small row counts).
        tm = rows
        grid = (1,)
    else:
        # tm is a multiple of sublane_pack (>=8) and lanes is a multiple of 128;
        # a partial trailing block (rows % tm != 0) is handled by Pallas masking.
        grid = (pl.cdiv(rows, tm),)

    out2d = pl.pallas_call(
        _identity_kernel,
        out_shape=jax.ShapeDtypeStruct((rows, lanes), x.dtype),
        grid=grid,
        in_specs=[pl.BlockSpec((tm, lanes), lambda i: (i, 0))],
        out_specs=pl.BlockSpec((tm, lanes), lambda i: (i, 0)),
        # Output aliases the input buffer: no new HBM allocation for the result.
        input_output_aliases={0: 0},
        compiler_params=pltpu.CompilerParams(
            # Shard the row-tile axis across both TensorCores on v7x (no-op on v5e/v6e).
            dimension_semantics=("parallel",),
            vmem_limit_bytes=_VMEM_LIMIT_BYTES,
        ),
    )(x2d)

    return out2d.reshape(x.shape)


if __name__ == "__main__":
    key = jax.random.PRNGKey(0)

    # NCHW input, small shapes: batch=2, channels=4, spatial=16x16 (VGG16-style layout).
    x = jax.random.normal(key, (2, 4, 16, 16), dtype=jnp.float32)
    y = identity(x)
    jax.block_until_ready(y)
    assert y.shape == x.shape, f"shape mismatch: {y.shape} vs {x.shape}"
    assert y.dtype == x.dtype, f"dtype mismatch: {y.dtype} vs {x.dtype}"
    assert bool(jnp.all(y == x)), "identity output does not match input"

    # bf16 input exercises the 16-row sublane-packing path.
    x_bf16 = jax.random.normal(key, (2, 4, 16, 16), dtype=jnp.bfloat16)
    y_bf16 = identity(x_bf16)
    jax.block_until_ready(y_bf16)
    assert y_bf16.shape == x_bf16.shape and y_bf16.dtype == x_bf16.dtype
    assert bool(jnp.all(y_bf16 == x_bf16))

    # Odd-sized input exercises the bit-exact fallback path (no kernel).
    x_odd = jax.random.normal(key, (3, 5, 7), dtype=jnp.float32)
    y_odd = identity(x_odd)
    jax.block_until_ready(y_odd)
    assert y_odd.shape == x_odd.shape and bool(jnp.all(y_odd == x_odd))

    # Empty input must not crash and must round-trip.
    x_empty = jnp.zeros((0, 4, 16, 16), dtype=jnp.float32)
    y_empty = identity(x_empty)
    assert y_empty.shape == x_empty.shape and y_empty.dtype == x_empty.dtype

    print("KERNEL_OK")
</pallas_src>

<mosaic_0001>
module attributes {stable_mosaic.version = 11 : i64} {
  func.func @_identity_kernel(%arg0: i32, %arg1: memref<1x2048xf32, #tpu.memory_space<vmem>>, %arg2: memref<1x2048xf32, #tpu.memory_space<vmem>>) attributes {dimension_semantics = [#tpu.dimension_semantics<parallel>], iteration_bounds = array<i64: 1>, scalar_prefetch = 0 : i64, scratch_operands = 0 : i64, tpu.core_type = #tpu.core_type<tc>, window_params = [{transform_indices = @transform_0, window_bounds = array<i64: 1, 2048>}, {transform_indices = @transform_1, window_bounds = array<i64: 1, 2048>}]} {
    %c0 = arith.constant 0 : index
    %c0_0 = arith.constant 0 : index
    %0 = vector.load %arg1[%c0, %c0_0] : memref<1x2048xf32, #tpu.memory_space<vmem>>, vector<1x2048xf32>
    %c0_1 = arith.constant 0 : index
    %c0_2 = arith.constant 0 : index
    %1 = vector.load %arg2[%c0_1, %c0_2] : memref<1x2048xf32, #tpu.memory_space<vmem>>, vector<1x2048xf32>
    tpu.vector_store %arg2[%c0_1, %c0_2], %0 {strides = array<i32>} : memref<1x2048xf32, #tpu.memory_space<vmem>>, vector<1x2048xf32>,
    return
  }
  func.func @transform_0(%arg0: i32) -> (i32, i32) {
    %c0_i32 = arith.constant 0 : i32
    %c0_i32_0 = arith.constant 0 : i32
    return %arg0, %c0_i32 : i32, i32
  }
  func.func @transform_1(%arg0: i32) -> (i32, i32) {
    %c0_i32 = arith.constant 0 : i32
    %c0_i32_0 = arith.constant 0 : i32
    return %arg0, %c0_i32 : i32, i32
  }
}

</mosaic_0001>

<bundles_post_ra>
// kernel: tpu_custom_call.1
= control target key start
LH: loop header
LB: loop body
LE: loop exit
PB: predicated region body
PF: predicated region fallthrough
CT: control target
= control target key end

     0   :  { %6 = vsyncpa [#allocation3], 0  ;;  %s116_s0 = inlined_call_operand.hbm [shape: f32[1,2048], index: 0, kind: input, shape index: {}, may-alias: {0,1}]   ;;  %s117_s1 = inlined_call_operand.hbm [shape: f32[1,2048], index: 1, kind: output, shape index: {}, may-alias: {0,1}]  }
   0x1   :  { %7 = vsyncpa [#allocation4], 0  ;;  %s13_s8 = sshll.u32 %s116_s0, 4  ;;  %s98_s9 = smov [#allocation2]   ;;  %s14_s8 = int_to_ptr.hbm [resolvable:$true] %s13_s8 }
   0x2   :  { %s15_s10 = sshll.u32 %s98_s9, 4  ;;  %s16_s10 = int_to_ptr.vmem [resolvable:$true] %s15_s10 }
   0x3   :  { %18 = dma.hbm_to_vmem [thread:$0]  %s14_s8, 256, %s16_s10, [#allocation3]  }
   0x4   :  { %94 = dma.done.wait [#allocation3], 256  }
   0x5   :  { %95 = vsyncadd [#allocation3], 4294967040  ;;  %s99_s11 = smov [#allocation5]   ;;  %s34_s15 = sshll.u32 %s117_s1, 4  ;;  %v23_v0 = vld [vmem:[#allocation2] sm:$0xff]  ;;  %v24_v1 = vld [vmem:[#allocation2 + $0x8] sm:$0xff]  ;;  %s35_s15 = int_to_ptr.hbm [resolvable:$true] %s34_s15 }
   0x6   :  { %s32_s12 = sshll.u32 %s99_s11, 4  ;;  %25 = vst [vmem:[#allocation5] sm:$0xff] %v23_v0  ;;  %s33_s12 = int_to_ptr.vmem [resolvable:$true] %s32_s12 }
   0x7   :  { %26 = vst [vmem:[#allocation5 + $0x8] sm:$0xff] %v24_v1 }
   0x8   :  { %37 = dma.vmem_to_hbm [thread:$0]  %s33_s12, 256, %s35_s15, [#allocation4]  }
   0x9   :  { %96 = dma.done.wait [#allocation4], 256  }
   0xa   :  { %97 = vsyncadd [#allocation4], 4294967040 }
   0xb   :  { %42 = vsyncpa [#allocation3], 1 }
   0xc   :  { %43 = vsyncpa [#allocation4], 1 }

</bundles_post_ra>
